<compile_context>
chip_gen: v5e
topology: v5e:2x2
jax: 0.10.0
libtpu: 0.0.40
codegen_flags: <defaults>
</compile_context>

<pallas_src>
import functools

import jax
import jax.numpy as jnp
from jax import lax
from jax.experimental import pallas as pl
from jax.experimental.pallas import tpu as pltpu

K = 11            # conv1 kernel size
S = 10            # conv1 stride
NEG_SLOPE = 0.01  # nn.LeakyReLU() default
LANE = 128


def _leaky(x):
    return jnp.where(x >= 0, x, NEG_SLOPE * x)


def _fused_kernel(p_ref, w1_ref, b1_ref, w2_ref, b2_ref, w3_ref, b3_ref,
                  o_ref):
    """conv1-as-GEMM + two 1x1 convs + LeakyReLU, for one (batch, M-tile).

    Everything is lane-dense in the output-pixel axis M (last dim -> lanes):
      p_ref : (Kin, TM)    im2col patch columns, Kin = C*11*11
      w1_ref: (c1, Kin)    conv1 weight: thin c1 rows stream through the MXU,
                           the big patch tile is the stationary RHS
      b1_ref: (c1, 1)      f32 bias
      w2_ref: (c2, c1)     1x1 conv2 weight
      b2_ref: (c2, 1)
      w3_ref: (c_end, c2)  1x1 conv3 weight
      b3_ref: (c_end, 1)
      o_ref : (c_end, TM)  lane-dense output tile (f32)
    """
    cdt = w1_ref.dtype

    # conv1 as GEMM: (c1, Kin) @ (Kin, TM) -> (c1, TM), f32 accumulation.
    h1 = jnp.dot(w1_ref[...], p_ref[...], preferred_element_type=jnp.float32)
    h1 = _leaky(h1 + b1_ref[...])                               # (c1, TM)

    # 1x1 conv2.
    h2 = jnp.dot(w2_ref[...], h1.astype(cdt),
                 preferred_element_type=jnp.float32)
    h2 = _leaky(h2 + b2_ref[...])                               # (c2, TM)

    # 1x1 conv3.
    h3 = jnp.dot(w3_ref[...], h2.astype(cdt),
                 preferred_element_type=jnp.float32)
    h3 = _leaky(h3 + b3_ref[...])                               # (c_end, TM)

    o_ref[...] = h3.astype(o_ref.dtype)


def terrain_downsample_k11s10(x, params, *, tm=2048,
                              compute_dtype=jnp.float32):
    """x: (N, C_in, H, W) float32 NCHW. Returns (N, c_end, Ho, Wo) NCHW."""
    w1, b1 = params["w1"], params["b1"]   # (c1, C, 11, 11), (c1,)
    w2, b2 = params["w2"], params["b2"]   # (c2, c1, 1, 1), (c2,)
    w3, b3 = params["w3"], params["b3"]   # (c_end, c2, 1, 1), (c_end,)

    N, C, H, W = x.shape
    c1, c2, c_end = w1.shape[0], w2.shape[0], w3.shape[0]
    Ho = (H - K) // S + 1
    Wo = (W - K) // S + 1
    Mhw = Ho * Wo                         # output pixels per image
    Kin = C * K * K                       # im2col contraction dim

    # --- im2col via one XLA op, already in the (features, pixels) orientation
    #     the kernel wants.  Output feature order is c*K*K + ky*K + kx, which
    #     matches w1.reshape(c1, C*K*K).
    patches = lax.conv_general_dilated_patches(
        x.astype(compute_dtype), (K, K), (S, S), "VALID",
        dimension_numbers=("NCHW", "OIHW", "NCHW"),
        precision=lax.Precision.HIGHEST)          # (N, C*K*K, Ho, Wo)
    patches = patches.reshape(N, Kin, Mhw)        # contiguous merge of Ho,Wo

    # --- M tile (lane axis).  Full-extent block when small (satisfies the
    #     (8,128) rule by equaling the array dim); otherwise a multiple of
    #     128, with the ragged last block handled by Pallas edge masking.
    if Mhw <= tm:
        block_m = Mhw
    else:
        block_m = max(LANE, (tm // LANE) * LANE)
        block_m = min(block_m, Mhw)
    m_blocks = pl.cdiv(Mhw, block_m)

    # --- GEMM operands (biases stay f32; weights in compute dtype).
    w1m = w1.reshape(c1, Kin).astype(compute_dtype)      # (c1, Kin)
    w2m = w2.reshape(c2, c1).astype(compute_dtype)       # (c2, c1)
    w3m = w3.reshape(c_end, c2).astype(compute_dtype)    # (c_end, c2)
    b1m = b1.reshape(c1, 1).astype(jnp.float32)
    b2m = b2.reshape(c2, 1).astype(jnp.float32)
    b3m = b3.reshape(c_end, 1).astype(jnp.float32)

    out = pl.pallas_call(
        _fused_kernel,
        out_shape=jax.ShapeDtypeStruct((N, c_end, Mhw), jnp.float32),
        grid_spec=pltpu.PrefetchScalarGridSpec(
            num_scalar_prefetch=0,
            grid=(N, m_blocks),
            in_specs=[
                # patch columns: squeezed batch dim, full Kin, M tile
                pl.BlockSpec((None, Kin, block_m), lambda n, m: (n, 0, m)),
                pl.BlockSpec((c1, Kin), lambda n, m: (0, 0)),     # W1
                pl.BlockSpec((c1, 1), lambda n, m: (0, 0)),       # b1
                pl.BlockSpec((c2, c1), lambda n, m: (0, 0)),      # W2
                pl.BlockSpec((c2, 1), lambda n, m: (0, 0)),       # b2
                pl.BlockSpec((c_end, c2), lambda n, m: (0, 0)),   # W3
                pl.BlockSpec((c_end, 1), lambda n, m: (0, 0)),    # b3
            ],
            out_specs=pl.BlockSpec((None, c_end, block_m),
                                   lambda n, m: (n, 0, m)),
        ),
        compiler_params=pltpu.CompilerParams(
            dimension_semantics=("parallel", "parallel")),
    )(patches, w1m, b1m, w2m, b2m, w3m, b3m)

    # Already NCHW-blocked: just split Ho*Wo back into (Ho, Wo).
    return out.reshape(N, c_end, Ho, Wo).astype(x.dtype)


def init_params(key, c_start=1, c_end=1, c1=20, c2=40):
    """Deterministic Kaiming-normal (fan_in, a=0.2) weights, zero biases."""
    k1, k2, k3 = jax.random.split(key, 3)
    a = 0.2
    gain = (2.0 / (1.0 + a * a)) ** 0.5

    def kaiming(k, shape):
        fan_in = shape[1] * shape[2] * shape[3]
        std = gain / (fan_in ** 0.5)
        return std * jax.random.normal(k, shape, jnp.float32)

    return dict(
        w1=kaiming(k1, (c1, c_start, K, K)), b1=jnp.zeros((c1,), jnp.float32),
        w2=kaiming(k2, (c2, c1, 1, 1)),      b2=jnp.zeros((c2,), jnp.float32),
        w3=kaiming(k3, (c_end, c2, 1, 1)),   b3=jnp.zeros((c_end,), jnp.float32),
    )


def reference(x, params):
    """Plain-JAX (XLA conv, highest precision) reference of the forward."""
    def conv(h, w, b, stride):
        y = lax.conv_general_dilated(
            h, w, (stride, stride), "VALID",
            dimension_numbers=("NCHW", "OIHW", "NCHW"),
            precision=lax.Precision.HIGHEST)
        return y + b.reshape(1, -1, 1, 1)

    h = _leaky(conv(x, params["w1"], params["b1"], S))
    h = _leaky(conv(h, params["w2"], params["b2"], 1))
    h = _leaky(conv(h, params["w3"], params["b3"], 1))
    return h


if __name__ == "__main__":
    key = jax.random.PRNGKey(0)
    pkey, xkey1, xkey2 = jax.random.split(key, 3)

    c_start, c_end, c1, c2 = 3, 2, 20, 40
    params = init_params(pkey, c_start=c_start, c_end=c_end, c1=c1, c2=c2)

    fwd = jax.jit(terrain_downsample_k11s10)

    # Case 1: 41x41 -> (41-11)//10+1 = 4x4 output grid; one M block per image.
    x1 = jax.random.normal(xkey1, (2, c_start, 41, 41), jnp.float32)
    y1 = jax.block_until_ready(fwd(x1, params))
    r1 = reference(x1, params)
    assert y1.shape == r1.shape == (2, c_end, 4, 4), (y1.shape, r1.shape)
    assert jnp.allclose(y1, r1, atol=5e-2, rtol=5e-2), \
        float(jnp.max(jnp.abs(y1 - r1)))

    # Case 2: 131x131 -> 13x13 = 169 output pixels; tm=128 forces two M blocks
    # per image (the second one ragged) to exercise block-edge masking.
    fwd_small_tile = jax.jit(
        functools.partial(terrain_downsample_k11s10, tm=128))
    x2 = jax.random.normal(xkey2, (2, c_start, 131, 131), jnp.float32)
    y2 = jax.block_until_ready(fwd_small_tile(x2, params))
    r2 = reference(x2, params)
    assert y2.shape == r2.shape == (2, c_end, 13, 13), (y2.shape, r2.shape)
    assert jnp.allclose(y2, r2, atol=5e-2, rtol=5e-2), \
        float(jnp.max(jnp.abs(y2 - r2)))

    print("KERNEL_OK")
</pallas_src>

<mosaic_0001>
module attributes {stable_mosaic.version = 11 : i64} {
  func.func @_fused_kernel(%arg0: i32, %arg1: i32, %arg2: memref<1x363x16xf32, #tpu.memory_space<vmem>>, %arg3: memref<20x363xf32, #tpu.memory_space<vmem>>, %arg4: memref<20x1xf32, #tpu.memory_space<vmem>>, %arg5: memref<40x20xf32, #tpu.memory_space<vmem>>, %arg6: memref<40x1xf32, #tpu.memory_space<vmem>>, %arg7: memref<2x40xf32, #tpu.memory_space<vmem>>, %arg8: memref<2x1xf32, #tpu.memory_space<vmem>>, %arg9: memref<1x2x16xf32, #tpu.memory_space<vmem>>) attributes {dimension_semantics = [#tpu.dimension_semantics<parallel>, #tpu.dimension_semantics<parallel>], iteration_bounds = array<i64: 2, 1>, scalar_prefetch = 0 : i64, scratch_operands = 0 : i64, tpu.core_type = #tpu.core_type<tc>, window_params = [{transform_indices = @transform_0, window_bounds = array<i64: 1, 363, 16>}, {pipeline_mode = #tpu.pipeline_mode<synchronous>, transform_indices = @transform_1, window_bounds = array<i64: 20, 363>}, {pipeline_mode = #tpu.pipeline_mode<synchronous>, transform_indices = @transform_2, window_bounds = array<i64: 20, 1>}, {pipeline_mode = #tpu.pipeline_mode<synchronous>, transform_indices = @transform_3, window_bounds = array<i64: 40, 20>}, {pipeline_mode = #tpu.pipeline_mode<synchronous>, transform_indices = @transform_4, window_bounds = array<i64: 40, 1>}, {pipeline_mode = #tpu.pipeline_mode<synchronous>, transform_indices = @transform_5, window_bounds = array<i64: 2, 40>}, {pipeline_mode = #tpu.pipeline_mode<synchronous>, transform_indices = @transform_6, window_bounds = array<i64: 2, 1>}, {transform_indices = @transform_7, window_bounds = array<i64: 1, 2, 16>}]} {
    %c0 = arith.constant 0 : index
    %c0_0 = arith.constant 0 : index
    %0 = vector.load %arg3[%c0, %c0_0] : memref<20x363xf32, #tpu.memory_space<vmem>>, vector<20x363xf32>
    %c0_1 = arith.constant 0 : index
    %c0_2 = arith.constant 0 : index
    %c0_3 = arith.constant 0 : index
    %1 = vector.load %arg2[%c0_1, %c0_2, %c0_3] : memref<1x363x16xf32, #tpu.memory_space<vmem>>, vector<1x363x16xf32>
    %2 = vector.shape_cast %1 : vector<1x363x16xf32> to vector<363x16xf32>
    %cst = arith.constant dense<0.000000e+00> : vector<20x16xf32>
    %3 = tpu.matmul %0, %2, %cst {dimension_numbers = #tpu.dot_dimension_numbers<[1], [0], [0], [1], [0, 0, 1, 1], [], []>} : vector<20x363xf32>, vector<363x16xf32>, vector<20x16xf32> -> vector<20x16xf32>
    %c0_4 = arith.constant 0 : index
    %c0_5 = arith.constant 0 : index
    %4 = vector.load %arg4[%c0_4, %c0_5] : memref<20x1xf32, #tpu.memory_space<vmem>>, vector<20x1xf32>
    %5 = vector.broadcast %4 : vector<20x1xf32> to vector<20x16xf32>
    %6 = arith.addf %3, %5 : vector<20x16xf32>
    %cst_6 = arith.constant 0.000000e+00 : f32
    %7 = vector.broadcast %cst_6 : f32 to vector<20x16xf32>
    %8 = arith.cmpf oge, %6, %7 : vector<20x16xf32>
    %cst_7 = arith.constant 0.00999999977 : f32
    %9 = vector.broadcast %cst_7 : f32 to vector<20x16xf32>
    %10 = arith.mulf %9, %6 : vector<20x16xf32>
    %11 = arith.select %8, %6, %10 : vector<20x16xi1>, vector<20x16xf32>
    %c0_8 = arith.constant 0 : index
    %c0_9 = arith.constant 0 : index
    %12 = vector.load %arg5[%c0_8, %c0_9] : memref<40x20xf32, #tpu.memory_space<vmem>>, vector<40x20xf32>
    %cst_10 = arith.constant dense<0.000000e+00> : vector<40x16xf32>
    %13 = tpu.matmul %12, %11, %cst_10 {dimension_numbers = #tpu.dot_dimension_numbers<[1], [0], [0], [1], [0, 0, 1, 1], [], []>} : vector<40x20xf32>, vector<20x16xf32>, vector<40x16xf32> -> vector<40x16xf32>
    %c0_11 = arith.constant 0 : index
    %c0_12 = arith.constant 0 : index
    %14 = vector.load %arg6[%c0_11, %c0_12] : memref<40x1xf32, #tpu.memory_space<vmem>>, vector<40x1xf32>
    %15 = vector.broadcast %14 : vector<40x1xf32> to vector<40x16xf32>
    %16 = arith.addf %13, %15 : vector<40x16xf32>
    %cst_13 = arith.constant 0.000000e+00 : f32
    %17 = vector.broadcast %cst_13 : f32 to vector<40x16xf32>
    %18 = arith.cmpf oge, %16, %17 : vector<40x16xf32>
    %cst_14 = arith.constant 0.00999999977 : f32
    %19 = vector.broadcast %cst_14 : f32 to vector<40x16xf32>
    %20 = arith.mulf %19, %16 : vector<40x16xf32>
    %21 = arith.select %18, %16, %20 : vector<40x16xi1>, vector<40x16xf32>
    %c0_15 = arith.constant 0 : index
    %c0_16 = arith.constant 0 : index
    %22 = vector.load %arg7[%c0_15, %c0_16] : memref<2x40xf32, #tpu.memory_space<vmem>>, vector<2x40xf32>
    %cst_17 = arith.constant dense<0.000000e+00> : vector<2x16xf32>
    %23 = tpu.matmul %22, %21, %cst_17 {dimension_numbers = #tpu.dot_dimension_numbers<[1], [0], [0], [1], [0, 0, 1, 1], [], []>} : vector<2x40xf32>, vector<40x16xf32>, vector<2x16xf32> -> vector<2x16xf32>
    %c0_18 = arith.constant 0 : index
    %c0_19 = arith.constant 0 : index
    %24 = vector.load %arg8[%c0_18, %c0_19] : memref<2x1xf32, #tpu.memory_space<vmem>>, vector<2x1xf32>
    %25 = vector.broadcast %24 : vector<2x1xf32> to vector<2x16xf32>
    %26 = arith.addf %23, %25 : vector<2x16xf32>
    %cst_20 = arith.constant 0.000000e+00 : f32
    %27 = vector.broadcast %cst_20 : f32 to vector<2x16xf32>
    %28 = arith.cmpf oge, %26, %27 : vector<2x16xf32>
    %cst_21 = arith.constant 0.00999999977 : f32
    %29 = vector.broadcast %cst_21 : f32 to vector<2x16xf32>
    %30 = arith.mulf %29, %26 : vector<2x16xf32>
    %31 = arith.select %28, %26, %30 : vector<2x16xi1>, vector<2x16xf32>
    %c0_22 = arith.constant 0 : index
    %c0_23 = arith.constant 0 : index
    %c0_24 = arith.constant 0 : index
    %32 = vector.load %arg9[%c0_22, %c0_23, %c0_24] : memref<1x2x16xf32, #tpu.memory_space<vmem>>, vector<1x2x16xf32>
    %33 = vector.shape_cast %32 : vector<1x2x16xf32> to vector<2x16xf32>
    %34 = vector.shape_cast %31 : vector<2x16xf32> to vector<1x2x16xf32>
    tpu.vector_store %arg9[%c0_22, %c0_23, %c0_24], %34 {strides = array<i32>} : memref<1x2x16xf32, #tpu.memory_space<vmem>>, vector<1x2x16xf32>,
    return
  }
  func.func @transform_0(%arg0: i32, %arg1: i32) -> (i32, i32, i32) {
    %c0_i32 = arith.constant 0 : i32
    %c0_i32_0 = arith.constant 0 : i32
    return %arg0, %c0_i32, %arg1 : i32, i32, i32
  }
  func.func @transform_1(%arg0: i32, %arg1: i32) -> (i32, i32) {
    %c0_i32 = arith.constant 0 : i32
    %c0_i32_0 = arith.constant 0 : i32
    %c0_i32_1 = arith.constant 0 : i32
    return %c0_i32, %c0_i32_0 : i32, i32
  }
  func.func @transform_2(%arg0: i32, %arg1: i32) -> (i32, i32) {
    %c0_i32 = arith.constant 0 : i32
    %c0_i32_0 = arith.constant 0 : i32
    %c0_i32_1 = arith.constant 0 : i32
    return %c0_i32, %c0_i32_0 : i32, i32
  }
  func.func @transform_3(%arg0: i32, %arg1: i32) -> (i32, i32) {
    %c0_i32 = arith.constant 0 : i32
    %c0_i32_0 = arith.constant 0 : i32
    %c0_i32_1 = arith.constant 0 : i32
    return %c0_i32, %c0_i32_0 : i32, i32
  }
  func.func @transform_4(%arg0: i32, %arg1: i32) -> (i32, i32) {
    %c0_i32 = arith.constant 0 : i32
    %c0_i32_0 = arith.constant 0 : i32
    %c0_i32_1 = arith.constant 0 : i32
    return %c0_i32, %c0_i32_0 : i32, i32
  }
  func.func @transform_5(%arg0: i32, %arg1: i32) -> (i32, i32) {
    %c0_i32 = arith.constant 0 : i32
    %c0_i32_0 = arith.constant 0 : i32
    %c0_i32_1 = arith.constant 0 : i32
    return %c0_i32, %c0_i32_0 : i32, i32
  }
  func.func @transform_6(%arg0: i32, %arg1: i32) -> (i32, i32) {
    %c0_i32 = arith.constant 0 : i32
    %c0_i32_0 = arith.constant 0 : i32
    %c0_i32_1 = arith.constant 0 : i32
    return %c0_i32, %c0_i32_0 : i32, i32
  }
  func.func @transform_7(%arg0: i32, %arg1: i32) -> (i32, i32, i32) {
    %c0_i32 = arith.constant 0 : i32
    %c0_i32_0 = arith.constant 0 : i32
    return %arg0, %c0_i32, %arg1 : i32, i32, i32
  }
}

</mosaic_0001>

<bundles_post_ra>
// kernel: terrain_downsample_k11s10.1
= control target key start
LH: loop header
LB: loop body
LE: loop exit
PB: predicated region body
PF: predicated region fallthrough
CT: control target
= control target key end

     0   :  { %s811_s24 = smov 0   ;;  %s813_s25 = smov 0   ;;  %s976_s0 = inlined_call_operand.vmem [shape: f32[2,363,16], index: 0, kind: input, shape index: {}]   ;;  %s977_s1 = inlined_call_operand.vmem [shape: f32[20,363], index: 1, kind: input, shape index: {}]   ;;  %s978_s2 = inlined_call_operand.vmem [shape: f32[20,1], index: 2, kind: input, shape index: {}]   ;;  %s979_s3 = inlined_call_operand.vmem [shape: f32[40,20], index: 3, kind: input, shape index: {}]   ;;  %s980_s4 = inlined_call_operand.vmem [shape: f32[40,1], index: 4, kind: input, shape index: {}]   ;;  %s981_s5 = inlined_call_operand.vmem [shape: f32[2,40], index: 5, kind: input, shape index: {}]   ;;  %s982_s6 = inlined_call_operand.vmem [shape: f32[2,1], index: 6, kind: input, shape index: {}]   ;;  %s983_s7 = inlined_call_operand.vmem [shape: f32[2,2,16], index: 7, kind: output, shape index: {}]  }
   0x1   :  { %s815_s26 = smov 0  }
   0x2 LB: > { %s29_s27 = sadd.s32 1, %s764_s25  ;;  %p701_p0 = scmp.ge.s32.totalorder %s768_s26, 1  ;;  %s768_s26 = sphi %s815_s26, %s17_s26   ;;  %s764_s25 = sphi %s813_s25, %s985_s25   ;;  %s760_s24 = sphi %s811_s24, %s984_s24  }
   0x3   : > { %p31_p1 = scmp.ge.s32.totalorder %s29_s27, 2  ;;  %p256_p2 = scmp.lt.s32.totalorder %s768_s26, 3 }
   0x5   : > { %s987_s27 = smov (%p31_p1, %s29_s27), 0  ;;  %p257_p3 = pnand %p701_p0, %p256_p2 }
   0x6   : > { %p293_p4 = scmp.lt.s32.totalorder (!%p257_p3), %s760_s24, 1 }
   0x7   : > { %260 = sbr.rel (%p257_p3) target bundleno = 520 (0x208), region = 48 }
   0xc   : > { %s989_s24 = smov (!%p293_p4, %s760_s24), 1  ;;  %vm391_vm0 = vcmask 1042432   ;;  %v770_v8 = vmov 0   ;;  %v365_v28 = vld [vmem:[%s978_s2 + $0x10] sm:$0xf]  ;;  %v363_v32 = vld [vmem:[%s978_s2] sm:$0xff] }
   0xd   : > { %s717_s28 = smul.u32 368, %s989_s24  ;;  %743 = vset.pattern.permute.xlu0 %v770_v8  ;;  %744 = vset.pattern.permute.xlu1 %v770_v8  ;;  %v364_v39 = vld [vmem:[%s978_s2 + $0x8] sm:$0xff]  ;;  %v491_v43 = vld [vmem:[%s980_s4 + $0x20] sm:$0xff]  ;;  %v310_v48 = vld [vmem:[%s977_s1 + $0x10] sm:$0xff]  ;;  %vm381_vm1 = vcmask 875520   ;;  %vm533_vm3 = vcmask 1043456  }
   0xe   : > { %745 = vset.pattern.permute.xlu2 %v770_v8  ;;  %378 = vperm.xlu0 %743, %v365_v28   ;;  %v308_v51 = vld [vmem:[%s977_s1] sm:$0xff]  ;;  %v309_v53 = vld [vmem:[%s977_s1 + $0x8] sm:$0xff]  ;;  %v311_v57 = vld [vmem:[%s977_s1 + $0x18] sm:$0xff]  ;;  %vm517_vm6 = vcmask 162816   ;;  %vm591_vm12 = vcmask 326656   ;;  %s703_s19 = sshll.u32 %s989_s24, 1 }
   0xf   : > { %s835_s8 = scalar_lea.vmem %s976_s0, %s717_s28  ;;  %368 = vperm.xlu1 %744, %v363_v32   ;;  %v488_v54 = vld [vmem:[%s980_s4 + $0x8] sm:$0xff]  ;;  %v487_v55 = vld [vmem:[%s980_s4] sm:$0xff]  ;;  %v314_v60 = vld [vmem:[%s977_s1 + $0x30] sm:$0xf]  ;;  %s307_s22 = scalar_lea.vmem %s983_s7, %s703_s19  ;;  %vm618_vm14 = vcmask 123904  }
  0x10   : > { %v332_v0 = vld [vmem:[%s835_s8 + $0x78] sm:$0xff]  ;;  %v331_v1 = vld [vmem:[%s835_s8 + $0x70] sm:$0xff]  ;;  %v362_v3 = vld [vmem:[%s835_s8 + $0x168] sm:$0x7] }
  0x11   : > { %v348_v2 = vld [vmem:[%s835_s8 + $0xf8] sm:$0xff]  ;;  %395 = vmatpush.msra.mxu0 %v332_v0  ;;  %v347_v4 = vld [vmem:[%s835_s8 + $0xf0] sm:$0xff]  ;;  %704 = vmatpush.msk.msra.mxu2 %vm391_vm0, %v362_v3  ;;  %v330_v5 = vld [vmem:[%s835_s8 + $0x68] sm:$0xff] }
  0x12   : > { %421 = vmatpush.msra.mxu1 %v348_v2  ;;  %v361_v6 = vld [vmem:[%s835_s8 + $0x160] sm:$0xff]  ;;  %v346_v7 = vld [vmem:[%s835_s8 + $0xe8] sm:$0xff]  ;;  %v360_v9 = vld [vmem:[%s835_s8 + $0x158] sm:$0xff] }
  0x13   : > { %396 = vmatpush.msra.mxu0 %v331_v1  ;;  %450 = vmatpush.msra.mxu2 %v361_v6  ;;  %v329_v10 = vld [vmem:[%s835_s8 + $0x60] sm:$0xff]  ;;  %v359_v12 = vld [vmem:[%s835_s8 + $0x150] sm:$0xff]  ;;  %v328_v13 = vld [vmem:[%s835_s8 + $0x58] sm:$0xff] }
  0x14   : > { %422 = vmatpush.msra.mxu1 %v347_v4  ;;  %v345_v11 = vld [vmem:[%s835_s8 + $0xe0] sm:$0xff]  ;;  %v344_v14 = vld [vmem:[%s835_s8 + $0xd8] sm:$0xff]  ;;  %v358_v15 = vld [vmem:[%s835_s8 + $0x148] sm:$0xff] }
  0x15   : > { %397 = vmatpush.msra.mxu0 %v330_v5  ;;  %451 = vmatpush.msra.mxu2 %v360_v9  ;;  %v327_v16 = vld [vmem:[%s835_s8 + $0x50] sm:$0xff]  ;;  %v357_v18 = vld [vmem:[%s835_s8 + $0x140] sm:$0xff]  ;;  %v326_v19 = vld [vmem:[%s835_s8 + $0x48] sm:$0xff] }
  0x16   : > { %423 = vmatpush.msra.mxu1 %v346_v7  ;;  %v343_v17 = vld [vmem:[%s835_s8 + $0xd0] sm:$0xff]  ;;  %v342_v20 = vld [vmem:[%s835_s8 + $0xc8] sm:$0xff]  ;;  %v356_v21 = vld [vmem:[%s835_s8 + $0x138] sm:$0xff]  ;;  %373 = vperm.xlu0 %743, %v364_v39  }
  0x17   : > { %398 = vmatpush.msra.mxu0 %v329_v10  ;;  %452 = vmatpush.msra.mxu2 %v359_v12  ;;  %v325_v22 = vld [vmem:[%s835_s8 + $0x40] sm:$0xff]  ;;  %v355_v24 = vld [vmem:[%s835_s8 + $0x130] sm:$0xff]  ;;  %v324_v25 = vld [vmem:[%s835_s8 + $0x38] sm:$0xff] }
  0x18   : > { %424 = vmatpush.msra.mxu1 %v345_v11  ;;  %v341_v23 = vld [vmem:[%s835_s8 + $0xc0] sm:$0xff]  ;;  %v340_v26 = vld [vmem:[%s835_s8 + $0xb8] sm:$0xff]  ;;  %v354_v27 = vld [vmem:[%s835_s8 + $0x128] sm:$0xff]  ;;  %514 = vperm.xlu1 %744, %v491_v43  }
  0x19   : > { %399 = vmatpush.msra.mxu0 %v328_v13  ;;  %453 = vmatpush.msra.mxu2 %v358_v15  ;;  %v323_v29 = vld [vmem:[%s835_s8 + $0x30] sm:$0xff]  ;;  %v353_v31 = vld [vmem:[%s835_s8 + $0x120] sm:$0xff]  ;;  %v322_v33 = vld [vmem:[%s835_s8 + $0x28] sm:$0xff] }
  0x1a   : > { %425 = vmatpush.msra.mxu1 %v344_v14  ;;  %v339_v30 = vld [vmem:[%s835_s8 + $0xb0] sm:$0xff]  ;;  %v338_v34 = vld [vmem:[%s835_s8 + $0xa8] sm:$0xff]  ;;  %v352_v35 = vld [vmem:[%s835_s8 + $0x118] sm:$0xff] }
  0x1b   : > { %400 = vmatpush.msra.mxu0 %v327_v16  ;;  %454 = vmatpush.msra.mxu2 %v357_v18  ;;  %v321_v36 = vld [vmem:[%s835_s8 + $0x20] sm:$0xff]  ;;  %v351_v38 = vld [vmem:[%s835_s8 + $0x110] sm:$0xff]  ;;  %v320_v40 = vld [vmem:[%s835_s8 + $0x18] sm:$0xff] }
  0x1c   : > { %426 = vmatpush.msra.mxu1 %v343_v17  ;;  %v337_v37 = vld [vmem:[%s835_s8 + $0xa0] sm:$0xff]  ;;  %v336_v41 = vld [vmem:[%s835_s8 + $0x98] sm:$0xff]  ;;  %v350_v42 = vld [vmem:[%s835_s8 + $0x108] sm:$0xff] }
  0x1d   : > { %401 = vmatpush.msra.mxu0 %v326_v19  ;;  %455 = vmatpush.msra.mxu2 %v356_v21  ;;  %v319_v44 = vld [vmem:[%s835_s8 + $0x10] sm:$0xff]  ;;  %v349_v46 = vld [vmem:[%s835_s8 + $0x100] sm:$0xff]  ;;  %v318_v47 = vld [vmem:[%s835_s8 + $0x8] sm:$0xff] }
  0x1e   : > { %427 = vmatpush.msra.mxu1 %v342_v20  ;;  %v335_v45 = vld [vmem:[%s835_s8 + $0x90] sm:$0xff]  ;;  %v334_v49 = vld [vmem:[%s835_s8 + $0x88] sm:$0xff]  ;;  %v317_v50 = vld [vmem:[%s835_s8] sm:$0xff]  ;;  %499 = vperm.xlu0 %743, %v488_v54  }
  0x1f   : > { %402 = vmatpush.msra.mxu0 %v325_v22  ;;  %456 = vmatpush.msra.mxu2 %v355_v24  ;;  %v333_v52 = vld [vmem:[%s835_s8 + $0x80] sm:$0xff]  ;;  %v313_v56 = vld [vmem:[%s977_s1 + $0x28] sm:$0xff]  ;;  %v315_v61 = vld [vmem:[%s977_s1 + $0x38] sm:$0xf] }
  0x20   : > { %428 = vmatpush.msra.mxu1 %v341_v23  ;;  %494 = vperm.xlu1 %744, %v487_v55   ;;  %v312_v58 = vld [vmem:[%s977_s1 + $0x20] sm:$0xff]  ;;  %v489_v28 = vld [vmem:[%s980_s4 + $0x10] sm:$0xff] }
  0x21   : > { %403 = vmatpush.msra.mxu0 %v324_v25  ;;  %457 = vmatpush.msra.mxu2 %v354_v27  ;;  %v316_v59 = vld [vmem:[%s977_s1 + $0x40] sm:$0xf]  ;;  %v483_v27 = vld [vmem:[%s979_s3 + $0x8] sm:$0xff] }
  0x22   : > { %429 = vmatpush.msra.mxu1 %v340_v26  ;;  %v482_v24 = vld [vmem:[%s979_s3] sm:$0xff]  ;;  %v490_v26 = vld [vmem:[%s980_s4 + $0x18] sm:$0xff] }
  0x23   : > { %404 = vmatpush.msra.mxu0 %v323_v29  ;;  %458 = vmatpush.msra.mxu2 %v353_v31  ;;  %v484_v29 = vld [vmem:[%s979_s3 + $0x10] sm:$0xff]  ;;  %v485_v31 = vld [vmem:[%s979_s3 + $0x18] sm:$0xff]  ;;  %v486_v32 = vld [vmem:[%s979_s3 + $0x20] sm:$0xff] }
  0x24   : > { %430 = vmatpush.msra.mxu1 %v339_v30  ;;  %509 = vperm.xlu2 %745, %v490_v26   ;;  %v585_v30 = vld [vmem:[%s982_s6] sm:$0x3] }
  0x25   : > { %405 = vmatpush.msra.mxu0 %v322_v33  ;;  %459 = vmatpush.msra.mxu2 %v352_v35 }
  0x26   : > { %431 = vmatpush.msra.mxu1 %v338_v34 }
  0x27   : > { %406 = vmatpush.msra.mxu0 %v321_v36  ;;  %460 = vmatpush.msra.mxu2 %v351_v38 }
  0x28   : > { %432 = vmatpush.msra.mxu1 %v337_v37 }
  0x29   : > { %407 = vmatpush.msra.mxu0 %v320_v40  ;;  %461 = vmatpush.msra.mxu2 %v350_v42 }
  0x2a   : > { %433 = vmatpush.msra.mxu1 %v336_v41 }
  0x2b   : > { %408 = vmatpush.msra.mxu0 %v319_v44  ;;  %462 = vmatpush.msra.mxu2 %v349_v46 }
  0x2c   : > { %434 = vmatpush.msra.mxu1 %v335_v45  ;;  %705 = vmatmul.msk.f32.vlgmr.msra.gmra.mxu2 %vm381_vm1, %v310_v48 }
  0x2d   : > { %409 = vmatpush.msra.mxu0 %v318_v47  ;;  %504 = vperm.xlu2 %745, %v489_v28  }
  0x2e   : > { %435 = vmatpush.msra.mxu1 %v334_v49 }
  0x2f   : > { %410 = vmatpush.msra.mxu0 %v317_v50 }
  0x30   : > { %411 = vmatmul.f32.vlgmr.msra.gmra.mxu0 %v308_v51  ;;  %436 = vmatpush.msra.mxu1 %v333_v52 }
  0x31   : > { %437 = vmatmul.f32.vlgmr.msra.gmra.mxu1 %v309_v53 }
  0x34   : > { %706 = vmatmul.msk.f32.gmra.mxu2 %vm381_vm1, %v313_v56 }
  0x35   : > { %588 = vperm.xlu2 %745, %v585_v30  }
  0x38   : > { %414 = vmatmul.f32.gmra.mxu0 %v311_v57  ;;  %v584_v57 = vld [vmem:[%s981_s5] sm:$0x3] }
  0x39   : > { %440 = vmatmul.f32.gmra.mxu1 %v312_v58 }
  0x3c   : > { %707 = vmatmul.msk.f32.gmra.mxu2 %vm381_vm1, %v316_v59 }
  0x40   : > { %417 = vmatmul.f32.gmra.mxu0 %v314_v60 }
  0x41   : > { %443 = vmatmul.f32.gmra.mxu1 %v315_v61 }
  0x7e   : > { %v510_v36 = vpop.permute.xlu2 %509 }
  0x80   : > { %v379_v62 = vpop.permute.xlu0 %378 }
  0x81   : > { %v369_v4 = vpop.permute.xlu1 %368 }
  0x87   : > { %v505_v39 = vpop.permute.xlu2 %504 }
  0x88   : > { %v374_v5 = vpop.permute.xlu0 %373 }
  0x8a   : > { %v515_v38 = vpop.permute.xlu1 %514 }
  0x8f   : > { %v589_v59 = vpop.permute.xlu2 %588 }
  0x90   : > { %v500_v44 = vpop.permute.xlu0 %499 }
  0x92   : > { %v495_v48 = vpop.permute.xlu1 %494 }
  0xad   : > { %v412_v63 = vpop.f32.mrf.mxu0 }
  0xae   : > { %v438_v0 = vpop.f32.mrf.mxu1  ;;  %v413_v8 = vadd.f32 %v412_v63, %v369_v4 }
  0xaf   : > { %v464_v1 = vpop.f32.mrf.mxu2 }
  0xb0   : > { %v439_v11 = vadd.f32 %v438_v0, %v413_v8 }
  0xb2   : > { %v465_v17 = vadd.f32 %v464_v1, %v439_v11 }
  0xb4   : > { %v476_v22 = vmul.f32 0.01, %v465_v17  ;;  %vm473_vm5 = vcmp.ge.f32.partialorder %v465_v17, 0.0 }
  0xb5   : > { %v415_v2 = vpop.f32.mrf.mxu0 }
  0xb6   : > { %v441_v3 = vpop.f32.mrf.mxu1  ;;  %v416_v6 = vadd.f32 %v415_v2, %v374_v5  ;;  %v479_v25 = vsel %vm473_vm5, %v465_v17, %v476_v22 }
  0xb7   : > { %v467_v7 = vpop.f32.mrf.mxu2 }
  0xb8   : > { %v442_v9 = vadd.f32 %v441_v3, %v416_v6 }
  0xba   : > { %v468_v14 = vadd.f32 %v467_v7, %v442_v9 }
  0xbc   : > { %v477_v20 = vmul.f32 0.01, %v468_v14  ;;  %vm474_vm4 = vcmp.ge.f32.partialorder %v468_v14, 0.0 }
  0xbd   : > { %v418_v10 = vpop.f32.mrf.mxu0 }
  0xbe   : > { %v419_v12 = vadd.f32 %v418_v10, %v379_v62  ;;  %v444_v13 = vpop.f32.mrf.mxu1  ;;  %v480_v23 = vsel %vm474_vm4, %v468_v14, %v477_v20 }
  0xbf   : > { %v470_v16 = vpop.f32.mrf.mxu2 }
  0xc0   : > { %v445_v15 = vadd.f32 %v444_v13, %v419_v12 }
  0xc2   : > { %v471_v18 = vadd.f32 %v470_v16, %v445_v15 }
  0xc4   : > { %vm475_vm2 = vcmp.ge.f32.partialorder %v471_v18, 0.0  ;;  %v478_v19 = vmul.f32 0.01, %v471_v18 }
  0xc6   : > { %v481_v21 = vsel %vm475_vm2, %v471_v18, %v478_v19 }
  0xc7   : > { %708 = vmatpush.msk.msra.mxu3 %vm533_vm3, %v481_v21 }
  0xc9   : > { %551 = vmatpush.msra.mxu3 %v480_v23 }
  0xcb   : > { %552 = vmatpush.msra.mxu3 %v479_v25 }
  0xcc   : > { %709 = vmatmul.msk.f32.vlgmr.msra.gmra.mxu3 %vm517_vm6, %v482_v24 }
  0xd4   : > { %710 = vmatmul.msk.f32.gmra.mxu3 %vm517_vm6, %v483_v27 }
  0xdc   : > { %711 = vmatmul.msk.f32.gmra.mxu3 %vm517_vm6, %v484_v29 }
  0xe4   : > { %712 = vmatmul.msk.f32.gmra.mxu3 %vm517_vm6, %v485_v31 }
  0xec   : > { %713 = vmatmul.msk.f32.gmra.mxu3 %vm517_vm6, %v486_v32 }
 0x14f   : > { %v554_v33 = vpop.f32.mrf.mxu3 }
 0x150   : > { %v555_v49 = vadd.f32 %v554_v33, %v495_v48 }
 0x152   : > { %v574_v55 = vmul.f32 0.01, %v555_v49  ;;  %vm569_vm11 = vcmp.ge.f32.partialorder %v555_v49, 0.0 }
 0x154   : > { %v579_v58 = vsel %vm569_vm11, %v555_v49, %v574_v55 }
 0x157   : > { %v557_v34 = vpop.f32.mrf.mxu3 }
 0x158   : > { %v558_v45 = vadd.f32 %v557_v34, %v500_v44 }
 0x15a   : > { %v575_v53 = vmul.f32 0.01, %v558_v45  ;;  %vm570_vm10 = vcmp.ge.f32.partialorder %v558_v45, 0.0 }
 0x15c   : > { %v580_v56 = vsel %vm570_vm10, %v558_v45, %v575_v53 }
 0x15f   : > { %v560_v35 = vpop.f32.mrf.mxu3 }
 0x160   : > { %v561_v42 = vadd.f32 %v560_v35, %v505_v39 }
 0x162   : > { %v576_v51 = vmul.f32 0.01, %v561_v42  ;;  %vm571_vm9 = vcmp.ge.f32.partialorder %v561_v42, 0.0 }
 0x164   : > { %v581_v54 = vsel %vm571_vm9, %v561_v42, %v576_v51 }
 0x167   : > { %v563_v37 = vpop.f32.mrf.mxu3 }
 0x168   : > { %v564_v40 = vadd.f32 %v563_v37, %v510_v36 }
 0x16a   : > { %v577_v47 = vmul.f32 0.01, %v564_v40  ;;  %vm572_vm8 = vcmp.ge.f32.partialorder %v564_v40, 0.0 }
 0x16c   : > { %v582_v52 = vsel %vm572_vm8, %v564_v40, %v577_v47 }
 0x16f   : > { %v566_v41 = vpop.f32.mrf.mxu3 }
 0x170   : > { %v567_v43 = vadd.f32 %v566_v41, %v515_v38 }
 0x172   : > { %vm573_vm7 = vcmp.ge.f32.partialorder %v567_v43, 0.0  ;;  %v578_v46 = vmul.f32 0.01, %v567_v43 }
 0x174   : > { %v583_v50 = vsel %vm573_vm7, %v567_v43, %v578_v46 }
 0x175   : > { %606 = vmatpush.msrb.mxu3 %v583_v50 }
 0x177   : > { %607 = vmatpush.msrb.mxu3 %v582_v52 }
 0x179   : > { %608 = vmatpush.msrb.mxu3 %v581_v54 }
 0x17b   : > { %609 = vmatpush.msrb.mxu3 %v580_v56 }
 0x17d   : > { %610 = vmatpush.msrb.mxu3 %v579_v58 }
 0x17e   : > { %714 = vmatmul.msk.f32.vlgmr.msrb.gmra.mxu3 %vm591_vm12, %v584_v57 }
 0x201   : > { %v612_v60 = vpop.f32.mrf.mxu3 }
 0x202   : > { %v613_v61 = vadd.f32 %v612_v60, %v589_v59 }
 0x204   : > { %vm615_vm13 = vcmp.ge.f32.partialorder %v613_v61, 0.0  ;;  %v616_v62 = vmul.f32 0.01, %v613_v61 }
 0x206   : > { %v617_v63 = vsel %vm615_vm13, %v613_v61, %v616_v62 }
 0x207   : > { %619 = vst.msk [vmem:[%s307_s22] sm:$0x3] %vm618_vm14, %v617_v63 }
 0x208 PF: > { %s17_s26 = sadd.s32 1, %s768_s26   ;;  %s984_s24 = smov %s764_s25 }
 0x209   : > { %p14_p5 = scmp.ge.s32.totalorder %s17_s26, 4   ;;  %s985_s25 = smov %s987_s27 }
 0x20b   :  { %16 = sbr.rel (!%p14_p5) target bundleno = 2 (0x2), region = 78 }

</bundles_post_ra>
